<compile_context>
chip_gen: v6e
topology: v6e:2x2x1
jax: 0.10.0
libtpu: 0.0.40
codegen_flags: <defaults>
</compile_context>

<pallas_src>
import functools

import numpy as np

import jax
import jax.numpy as jnp
from jax import lax
from jax.experimental import pallas as pl
from jax.experimental.pallas import tpu as pltpu

_EPS = 1e-13
_BLOCK_BYTES_CAP = 4 * 1024 * 1024      # per-input-block cap (double-buffered)


# ---------------------------------------------------------------------------
# Kernel 1: per-sample error + entropy, native (B, C) layout (classes on
# lanes, batch on sublanes).
#   err[b] = | argmax_c output[b, c] + 1 - label[b] |
#   ent[b] = - sum_c log2(output[b, c] + eps) * output[b, c]
# Inputs:  x_ref   (TB, C)  model dtype (f32 / bf16, upcast in-register)
#          lab_ref (TB, 1)  int/float labels
# Output:  out_ref (TB, 2)  f32   (col 0 = err, col 1 = ent)
# ---------------------------------------------------------------------------
def _metric_kernel(x_ref, lab_ref, out_ref):
    x = x_ref[...].astype(jnp.float32)           # (TB, C)
    lab = lab_ref[...].astype(jnp.float32)       # (TB, 1)
    # NOTE: labels are compared in f32; exact for label values < 2^24.
    c = x.shape[1]

    # argmax over classes (lane axis); first-maximal-index tie-break matches
    # torch.argmax.  Two lane (XLU) reductions -- free slack in a mem-bound
    # kernel.
    cls = lax.broadcasted_iota(jnp.int32, x.shape, 1)
    xmax = jnp.max(x, axis=1, keepdims=True)                          # (TB, 1)
    idx = jnp.min(jnp.where(x == xmax, cls, jnp.int32(c)),
                  axis=1, keepdims=True)                              # (TB, 1)

    err = jnp.abs(idx.astype(jnp.float32) + 1.0 - lab)                # (TB, 1)
    ent = -jnp.sum(jnp.log2(x + _EPS) * x, axis=1, keepdims=True)     # (TB, 1)

    out_ref[:, 0:1] = err
    out_ref[:, 1:2] = ent


def _choose_tile_b(b, c, itemsize):
    """Batch tile: multiple of 8, <= ~4 MiB input block, >=2 grid steps."""
    if b % 8 != 0 or b <= 8:
        return b                                    # single full block
    cap_rows = max(8, ((_BLOCK_BYTES_CAP // max(1, c * itemsize)) // 8) * 8)
    tb = min(b // 2, cap_rows, 512)                 # b//2 -> >=2 steps (v7x)
    tb = max(8, (tb // 8) * 8)
    while b % tb != 0:                              # make tb divide b
        tb -= 8
    return tb


def _errent_pallas(output, label):
    """output: (B, C) probabilities (any float dtype); label: (B,) -> (B, 2)."""
    b, c = output.shape
    tb = _choose_tile_b(b, c, output.dtype.itemsize)
    lab = label.reshape(b, 1)
    return pl.pallas_call(
        _metric_kernel,
        out_shape=jax.ShapeDtypeStruct((b, 2), jnp.float32),
        grid=(b // tb,),
        in_specs=[pl.BlockSpec((tb, c), lambda i: (i, 0)),
                  pl.BlockSpec((tb, 1), lambda i: (i, 0))],
        out_specs=pl.BlockSpec((tb, 2), lambda i: (i, 0)),
        compiler_params=pltpu.CompilerParams(
            dimension_semantics=("parallel",),
            vmem_limit_bytes=32 * 1024 * 1024),
    )(output, lab)


# ---------------------------------------------------------------------------
# Kernel 2: fused two-pass mean / unbiased std for BOTH memory columns.
# Input:  mem (M, 2) f32 (col 0 = err, col 1 = ent); whole buffer (~8 KB) in
#         one VMEM block.
# Output: (2, 2) f32: row 0 = [mean_err, mean_ent], row 1 = [std_err, std_ent]
# ---------------------------------------------------------------------------
def _stats_kernel(mem_ref, out_ref):
    x = mem_ref[...]                                               # (M, 2)
    m = x.shape[0]
    mean = jnp.sum(x, axis=0, keepdims=True) / jnp.float32(m)      # (1, 2)
    d = x - mean
    var = jnp.sum(d * d, axis=0, keepdims=True) / jnp.float32(m - 1)
    out_ref[0:1, :] = mean
    out_ref[1:2, :] = jnp.sqrt(var)


def _stats_pallas(mem_buf):
    m = mem_buf.shape[0]
    return pl.pallas_call(
        _stats_kernel,
        out_shape=jax.ShapeDtypeStruct((2, 2), jnp.float32),
        grid=(1,),
        in_specs=[pl.BlockSpec((m, 2), lambda i: (0, 0))],
        out_specs=pl.BlockSpec((2, 2), lambda i: (0, 0)),
    )(mem_buf)


# ---------------------------------------------------------------------------
# One fused executable per forward step: metric kernel + memory update
# (+ stats when the memory is full).  Single host dispatch per call.
# ---------------------------------------------------------------------------
@functools.partial(jax.jit, static_argnames=("max_memory", "with_stats"))
def _metric_step(output, label, mem_buf, *, max_memory, with_stats):
    errent = _errent_pallas(output, label)            # (B, 2) f32
    b = errent.shape[0]
    if b >= max_memory:
        # deque(maxlen): only the most recent max_memory samples survive.
        new_buf = errent[b - max_memory:, :]
    else:
        # Shift out the oldest b samples, append the new batch (order is
        # irrelevant for mean/std; only the retained sample set matters).
        new_buf = jnp.concatenate([mem_buf[b:], errent], axis=0)
    if with_stats:
        return new_buf, _stats_pallas(new_buf)
    return new_buf, None


# ---------------------------------------------------------------------------
# Host-side wrapper mirroring the PyTorch `metric` module.  The memory lives
# on device; only the fill count / step counter are Python ints.
# ---------------------------------------------------------------------------
class Metric:
    def __init__(self, max_memory=1000):
        assert max_memory >= 2
        self.max_memory = max_memory
        # col 0: error memory, col 1: entropy memory.
        self.mem_buf = jnp.zeros((max_memory, 2), jnp.float32)
        self._count = 0
        self.step = 0
        self.last_entropy_stats = None

    def increment_step(self):
        self.step += 1

    def forward(self, output, label):
        b = output.shape[0]
        full = min(self._count + b, self.max_memory) == self.max_memory

        self.mem_buf, stats = _metric_step(
            output, label, self.mem_buf,
            max_memory=self.max_memory, with_stats=full)
        self._count = min(self._count + b, self.max_memory)

        if full:
            mean, std = stats[0, 0], stats[1, 0]
            # TODO(synk): SummaryWriter.add_scalar has no Pallas equivalent;
            # stash the (already computed, free) entropy stats instead.
            self.last_entropy_stats = (stats[0, 1], stats[1, 1])
            return (mean, std)
        return (None, None)

    __call__ = forward


if __name__ == "__main__":
    key = jax.random.PRNGKey(0)
    B, C = 8, 16
    MAX_MEM = 16  # small memory so the demo reaches the "full" branch

    m = Metric(max_memory=MAX_MEM)

    k1, k2, k3, k4 = jax.random.split(key, 4)
    logits1 = jax.random.normal(k1, (B, C), dtype=jnp.float32)
    logits2 = jax.random.normal(k2, (B, C), dtype=jnp.float32)
    output1 = jax.nn.softmax(logits1, axis=1)
    output2 = jax.nn.softmax(logits2, axis=1)
    label1 = jax.random.randint(k3, (B,), 1, C + 1, dtype=jnp.int32)
    label2 = jax.random.randint(k4, (B,), 1, C + 1, dtype=jnp.int32)

    r1 = m(output1, label1)          # memory not full yet -> (None, None)
    mean, std = m(output2, label2)   # memory full -> (mean, std)

    assert r1 == (None, None)
    assert mean is not None and std is not None
    jax.block_until_ready((mean, std))

    # --- numpy reference check --------------------------------------------
    def ref_err(o, l):
        o = np.asarray(o, np.float32)
        l = np.asarray(l)
        return np.abs(np.argmax(o, axis=1) + 1 - l).astype(np.float32)

    def ref_ent(o):
        o = np.asarray(o, np.float32)
        return -np.sum(np.log2(o + 1e-13) * o, axis=1).astype(np.float32)

    errs = np.concatenate([ref_err(output1, label1),
                           ref_err(output2, label2)]).astype(np.float32)
    ents = np.concatenate([ref_ent(output1), ref_ent(output2)])

    ref_mean, ref_std = float(errs.mean()), float(errs.std(ddof=1))
    ref_ment, ref_sent = float(ents.mean()), float(ents.std(ddof=1))

    assert np.allclose(float(mean), ref_mean, rtol=1e-3, atol=1e-3), \
        (float(mean), ref_mean)
    assert np.allclose(float(std), ref_std, rtol=1e-3, atol=1e-3), \
        (float(std), ref_std)
    me, se = m.last_entropy_stats
    assert np.allclose(float(me), ref_ment, rtol=2e-3, atol=2e-3), \
        (float(me), ref_ment)
    assert np.allclose(float(se), ref_sent, rtol=2e-3, atol=2e-3), \
        (float(se), ref_sent)
    assert bool(jnp.isfinite(mean)) and bool(jnp.isfinite(std))

    print("KERNEL_OK")
</pallas_src>

<mosaic_0001>
module attributes {stable_mosaic.version = 11 : i64} {
  func.func @_metric_kernel(%arg0: i32, %arg1: memref<8x16xf32, #tpu.memory_space<vmem>>, %arg2: memref<8x1xi32, #tpu.memory_space<vmem>>, %arg3: memref<8x2xf32, #tpu.memory_space<vmem>>) attributes {dimension_semantics = [#tpu.dimension_semantics<parallel>], iteration_bounds = array<i64: 1>, scalar_prefetch = 0 : i64, scratch_operands = 0 : i64, tpu.core_type = #tpu.core_type<tc>, window_params = [{transform_indices = @transform_0, window_bounds = array<i64: 8, 16>}, {transform_indices = @transform_1, window_bounds = array<i64: 8, 1>}, {transform_indices = @transform_2, window_bounds = array<i64: 8, 2>}]} {
    %c0 = arith.constant 0 : index
    %c0_0 = arith.constant 0 : index
    %0 = vector.load %arg1[%c0, %c0_0] : memref<8x16xf32, #tpu.memory_space<vmem>>, vector<8x16xf32>
    %c0_1 = arith.constant 0 : index
    %c0_2 = arith.constant 0 : index
    %1 = vector.load %arg2[%c0_1, %c0_2] : memref<8x1xi32, #tpu.memory_space<vmem>>, vector<8x1xi32>
    %2 = arith.sitofp %1 : vector<8x1xi32> to vector<8x1xf32>
    %3 = tpu.iota {dimensions = array<i32: 1>} : vector<8x16xi32>
    %cst = arith.constant dense<0xFF800000> : vector<8xf32>
    %4 = vector.multi_reduction <maximumf>, %0, %cst [1] : vector<8x16xf32> to vector<8xf32>
    %5 = vector.shape_cast %4 : vector<8xf32> to vector<8x1xf32>
    %6 = vector.broadcast %5 : vector<8x1xf32> to vector<8x16xf32>
    %7 = arith.cmpf oeq, %0, %6 : vector<8x16xf32>
    %c16_i32 = arith.constant 16 : i32
    %8 = vector.broadcast %c16_i32 : i32 to vector<8x16xi32>
    %9 = arith.select %7, %3, %8 : vector<8x16xi1>, vector<8x16xi32>
    %cst_3 = arith.constant dense<2147483647> : vector<8xi32>
    %10 = vector.multi_reduction <minsi>, %9, %cst_3 [1] : vector<8x16xi32> to vector<8xi32>
    %11 = vector.shape_cast %10 : vector<8xi32> to vector<8x1xi32>
    %12 = arith.sitofp %11 : vector<8x1xi32> to vector<8x1xf32>
    %cst_4 = arith.constant 1.000000e+00 : f32
    %13 = vector.broadcast %cst_4 : f32 to vector<8x1xf32>
    %14 = arith.addf %12, %13 : vector<8x1xf32>
    %15 = arith.subf %14, %2 : vector<8x1xf32>
    %16 = math.absf %15 : vector<8x1xf32>
    %cst_5 = arith.constant 9.99999982E-14 : f32
    %17 = vector.broadcast %cst_5 : f32 to vector<8x16xf32>
    %18 = arith.addf %0, %17 : vector<8x16xf32>
    %19 = math.log %18 : vector<8x16xf32>
    %cst_6 = arith.constant 2.000000e+00 : f32
    %20 = math.log %cst_6 : f32
    %21 = vector.broadcast %20 : f32 to vector<8x16xf32>
    %22 = arith.divf %19, %21 : vector<8x16xf32>
    %23 = arith.mulf %22, %0 : vector<8x16xf32>
    %cst_7 = arith.constant dense<0.000000e+00> : vector<8xf32>
    %24 = vector.multi_reduction <add>, %23, %cst_7 [1] : vector<8x16xf32> to vector<8xf32>
    %25 = vector.shape_cast %24 : vector<8xf32> to vector<8x1xf32>
    %cst_8 = arith.constant 0.000000e+00 : f32
    %26 = vector.broadcast %cst_8 : f32 to vector<8x1xf32>
    %27 = arith.subf %26, %25 : vector<8x1xf32>
    %c0_9 = arith.constant 0 : index
    %c0_10 = arith.constant 0 : index
    %28 = vector.load %arg3[%c0_9, %c0_10] : memref<8x2xf32, #tpu.memory_space<vmem>>, vector<8x1xf32>
    tpu.vector_store %arg3[%c0_9, %c0_10], %16 {strides = array<i32>} : memref<8x2xf32, #tpu.memory_space<vmem>>, vector<8x1xf32>,
    %c0_11 = arith.constant 0 : index
    %c1 = arith.constant 1 : index
    %29 = vector.load %arg3[%c0_11, %c1] : memref<8x2xf32, #tpu.memory_space<vmem>>, vector<8x1xf32>
    tpu.vector_store %arg3[%c0_11, %c1], %27 {strides = array<i32>} : memref<8x2xf32, #tpu.memory_space<vmem>>, vector<8x1xf32>,
    return
  }
  func.func @transform_0(%arg0: i32) -> (i32, i32) {
    %c0_i32 = arith.constant 0 : i32
    %c0_i32_0 = arith.constant 0 : i32
    return %arg0, %c0_i32 : i32, i32
  }
  func.func @transform_1(%arg0: i32) -> (i32, i32) {
    %c0_i32 = arith.constant 0 : i32
    %c0_i32_0 = arith.constant 0 : i32
    return %arg0, %c0_i32 : i32, i32
  }
  func.func @transform_2(%arg0: i32) -> (i32, i32) {
    %c0_i32 = arith.constant 0 : i32
    %c0_i32_0 = arith.constant 0 : i32
    return %arg0, %c0_i32 : i32, i32
  }
}

</mosaic_0001>

<bundles_post_ra>
// kernel: _metric_step.1
= control target key start
LH: loop header
LB: loop body
LE: loop exit
PB: predicated region body
PF: predicated region fallthrough
CT: control target
= control target key end

     0   :  { %vm16_vm0 = vcmask 130048   ;;  %v14_v2 = vlaneseq  ;;  %vm51_vm3 = vcmask 7168   ;;  %vm53_vm4 = vcmask 15368   ;;  %s91_s0 = inlined_call_operand.vmem [shape: f32[8,16], index: 0, kind: input, shape index: {}]   ;;  %s92_s1 = inlined_call_operand.vmem [shape: s32[8,1], index: 1, kind: input, shape index: {}]   ;;  %s93_s2 = inlined_call_operand.vmem [shape: f32[8,2], index: 2, kind: output, shape index: {}]  }
   0x1   :  { %v11_v0 = vld [vmem:[%s91_s0] sm:$0xff] }
   0x2   :  { %v17_v1 = vsel %vm16_vm0, %v11_v0, -inf  ;;  %v15_v3 = vand.u32 127, %v14_v2  ;;  %v41_v9 = vadd.f32 1e-13, %v11_v0  ;;  %v12_v23 = vld [vmem:[%s92_s1] sm:$0xff] }
   0x3   :  { %18 = vmax.xlane.f32.xlu0 %v17_v1  ;;  %v13_v25 = vcvt.s32.f32 %v12_v23 }
   0x4   :  { %59 = vlog2.f32 %v41_v9 }
  0x11   :  { %v60_v10 = vpop.eup %59 }
  0x12   :  { %v43_v11 = vmul.f32 0.6931472, %v60_v10 }
  0x14   :  { %v45_v13 = vmul.f32 1.442695, %v43_v11 }
  0x16   :  { %v46_v16 = vmul.f32 %v45_v13, %v11_v0 }
  0x18   :  { %v47_v18 = vsel %vm16_vm0, %v46_v16, 0.0 }
  0x8c   :  { %v19_v4 = vpop.xlane.xlu0 %18 }
  0x8d   :  { %vm20_vm1 = vcmp.eq.f32.partialorder %v11_v0, %v19_v4 }
  0x8e   :  { %v21_v5 = vsel %vm20_vm1, %v15_v3, 16 }
  0x8f   :  { %v22_v6 = vsel %vm16_vm0, %v21_v5, 2147483647 }
  0x90   :  { %v24_v7 = vshra.s32 %v22_v6, 16  ;;  %v23_v12 = vand.u32 65535, %v22_v6 }
  0x92   :  { %v26_v8 = vcvt.s32.f32 %v24_v7  ;;  %v25_v15 = vcvt.s32.f32 %v23_v12 }
  0x94   :  { %27 = vmin.xlane.f32.xlu0 %v26_v8 }
 0x11d   :  { %v28_v14 = vpop.xlane.xlu0 %27 }
 0x11e   :  { %vm29_vm2 = vcmp.eq.f32.partialorder %v26_v8, %v28_v14  ;;  %v34_v19 = vcvt.f32.s32 %v28_v14 }
 0x11f   :  { %v30_v17 = vsel %vm29_vm2, %v25_v15, inf }
 0x120   :  { %31 = vmin.xlane.f32.xlu1 %v30_v17  ;;  %v35_v21 = vshll.u32 %v34_v19, 16 }
 0x124   :  { %48 = vadd.xlane.f32.xlu1 %v47_v18 }
 0x1a9   :  { %v32_v20 = vpop.xlane.xlu1 %31 }
 0x1aa   :  { %v33_v22 = vcvt.f32.s32 %v32_v20 }
 0x1ac   :  { %v36_v24 = vadd.s32 %v35_v21, %v33_v22 }
 0x1ad   :  { %v49_v28 = vpop.xlane.xlu1 %48 }
 0x1ae   :  { %v37_v26 = vcvt.s32.f32 %v36_v24  ;;  %v50_v30 = vsub.f32 0.0, %v49_v28 }
 0x1b0   :  { %v38_v27 = vadd.f32 1.0, %v37_v26 }
 0x1b2   :  { %v39_v29 = vsub.f32 %v38_v27, %v13_v25 }
 0x1b4   :  { %v40_v31 = vand.u32 2147483647, %v39_v29 }
 0x1b6   :  { %52 = vst.msk [vmem:[%s93_s2] sm:$0xff] %vm51_vm3, %v40_v31 }
 0x1b7   :  { %54 = vst.msk [vmem:[%s93_s2] sm:$0xff] %vm53_vm4, %v50_v30 }

</bundles_post_ra>
